<compile_context>
chip_gen: v6e
topology: v6e:2x2x1
jax: 0.10.0
libtpu: 0.0.40
codegen_flags: <defaults>
</compile_context>

<pallas_src>
import functools

import jax
import jax.numpy as jnp
from jax.experimental import pallas as pl
from jax.experimental.pallas import tpu as pltpu


# --------------------------------------------------------------------------------
# Kernels
# --------------------------------------------------------------------------------
def _actnorm_stats_kernel(x_ref, sum_ref, sumsq_ref, *, n_rows, block_rows,
                          mask_rows):
    """Streamed per-(packed)channel sum / sum-of-squares accumulation."""
    i = pl.program_id(0)

    @pl.when(i == 0)
    def _init():
        sum_ref[...] = jnp.zeros_like(sum_ref)
        sumsq_ref[...] = jnp.zeros_like(sumsq_ref)

    x = x_ref[...].astype(jnp.float32)                           # (TR, W)
    if mask_rows:  # static: only compiled when the last tile is partial
        row = jax.lax.broadcasted_iota(jnp.int32, x.shape, 0) + i * block_rows
        x = jnp.where(row < n_rows, x, 0.0)

    sum_ref[...] += jnp.sum(x, axis=0, keepdims=True)            # (1, W)
    sumsq_ref[...] += jnp.sum(x * x, axis=0, keepdims=True)      # (1, W)


def _actnorm_apply_kernel(ls_ref, sh_ref, z_ref, z_out_ref, *, reverse):
    """Per-(TR, W)-tile affine transform with already-known parameters."""
    z = z_ref[...].astype(jnp.float32)                           # (TR, W)
    log_scale = ls_ref[...]                                      # (1, W)
    shift = sh_ref[...]                                          # (1, W)
    if not reverse:
        out = jnp.exp(log_scale) * z + shift
    else:
        out = (z - shift) * jnp.exp(-log_scale)                  # mul, not per-elem div
    z_out_ref[...] = out.astype(z_out_ref.dtype)


# --------------------------------------------------------------------------------
# Wrappers
# --------------------------------------------------------------------------------
def _pack_factor(n_rows, n_channels):
    """Largest power-of-two p with p*C <= 128 lanes and n_rows % p == 0."""
    p = 1
    while (2 * p * n_channels <= 128) and (n_rows % (2 * p) == 0):
        p *= 2
    return p


def _choose_tile_rows(n_rows, width, itemsize, target_bytes=2 << 20):
    """Largest multiple-of-8 row tile keeping one tile ~<= 2 MiB."""
    tr = target_bytes // max(1, width * itemsize)
    tr = int(max(8, min(8192, tr))) // 8 * 8
    if n_rows <= tr:
        return n_rows            # full extent: always a legal block shape
    return tr


def _sanitize_tile_rows(tile_rows, n_rows):
    if tile_rows is None:
        return None
    tr = int(tile_rows)
    if tr >= n_rows:
        return n_rows
    return max(8, (tr // 8) * 8)


def _packed_view(z):
    """Flatten (B, T, C) -> lane-packed (Np, W) view plus packing metadata."""
    B, T, C = z.shape
    N = B * T
    p = _pack_factor(N, C)
    Np, W = N // p, p * C
    return z.reshape(Np, W), p, Np, W


def actnorm_init_params(z, *, reverse=False, tile_rows=None):
    """Data-dependent init: returns (log_scale, shift), each (1, C) float32."""
    B, T, C = z.shape
    N = B * T
    x2d, p, Np, W = _packed_view(z)
    tr = _sanitize_tile_rows(tile_rows, Np)
    if tr is None:
        tr = _choose_tile_rows(Np, W, jnp.dtype(z.dtype).itemsize)
    mask_rows = (Np % tr) != 0

    s, ss = pl.pallas_call(
        functools.partial(_actnorm_stats_kernel, n_rows=Np, block_rows=tr,
                          mask_rows=mask_rows),
        out_shape=(jax.ShapeDtypeStruct((1, W), jnp.float32),
                   jax.ShapeDtypeStruct((1, W), jnp.float32)),
        grid=(pl.cdiv(Np, tr),),
        in_specs=[pl.BlockSpec((tr, W), lambda i: (i, 0))],
        out_specs=(pl.BlockSpec((1, W), lambda i: (0, 0)),      # resident accumulators
                   pl.BlockSpec((1, W), lambda i: (0, 0))),
        compiler_params=pltpu.CompilerParams(
            dimension_semantics=("arbitrary",)),                # reduction axis
    )(x2d)

    # Fold the p lane-packed copies back to per-channel stats, then finalize.
    # Tiny (C,)-sized, data-independent math -> plain JAX.
    s = s.reshape(p, C).sum(axis=0)
    ss = ss.reshape(p, C).sum(axis=0)
    n = jnp.float32(N)
    mean = s / n
    var = (ss - s * mean) / (n - 1.0)                           # unbiased (torch.std)
    std = jnp.sqrt(jnp.maximum(var, 0.0))
    mu = mean / std                                             # == mean(x/std) exactly
    log_std = jnp.log(std + 1e-6)
    if not reverse:
        log_scale, shift = -log_std, -mu
    else:
        log_scale, shift = log_std, mu
    return log_scale.reshape(1, C), shift.reshape(1, C)


def actnorm_apply(z, log_scale, shift, *, reverse=False, tile_rows=None):
    """Tiled affine transform; returns transformed z with the input's shape/dtype."""
    B, T, C = z.shape
    x2d, p, Np, W = _packed_view(z)
    tr = _sanitize_tile_rows(tile_rows, Np)
    if tr is None:
        tr = _choose_tile_rows(Np, W, jnp.dtype(z.dtype).itemsize)

    ls = jnp.tile(jnp.asarray(log_scale, jnp.float32).reshape(1, C), (1, p))
    sh = jnp.tile(jnp.asarray(shift, jnp.float32).reshape(1, C), (1, p))

    out2d = pl.pallas_call(
        functools.partial(_actnorm_apply_kernel, reverse=reverse),
        out_shape=jax.ShapeDtypeStruct((Np, W), z.dtype),
        grid=(pl.cdiv(Np, tr),),
        in_specs=[pl.BlockSpec((1, W), lambda i: (0, 0)),       # log_scale (constant blk)
                  pl.BlockSpec((1, W), lambda i: (0, 0)),       # shift     (constant blk)
                  pl.BlockSpec((tr, W), lambda i: (i, 0))],     # z tile stream
        out_specs=pl.BlockSpec((tr, W), lambda i: (i, 0)),
        compiler_params=pltpu.CompilerParams(
            dimension_semantics=("parallel",)),                 # megacore sharding (v7x)
    )(ls, sh, x2d)
    return out2d.reshape(B, T, C)


class ActNormSeq:
    """JAX/Pallas port of the PyTorch ActNormSeq module (forward pass)."""

    def __init__(self, n_channels, tile_rows=None):
        self.n_channels = n_channels
        self.shift = jnp.zeros((1, 1, n_channels), jnp.float32)
        self.log_scale = jnp.zeros((1, 1, n_channels), jnp.float32)
        self.is_initialized = False
        self._tile_rows = tile_rows
        # TODO(synk): `is_initialized` is host-side Python state (mirrors the torch
        # buffer's .item() check); under jax.jit the init/apply branch would be
        # baked at trace time and the parameter write-back would not persist.

    def __call__(self, z, sample=False):
        B, T, C = z.shape
        assert C == self.n_channels
        reverse = bool(sample)

        if not self.is_initialized:
            ls, sh = actnorm_init_params(z, reverse=reverse,
                                         tile_rows=self._tile_rows)
            self.log_scale = ls.reshape(1, 1, C)
            self.shift = sh.reshape(1, 1, C)
            self.is_initialized = True

        z_out = actnorm_apply(z, self.log_scale, self.shift,
                              reverse=reverse, tile_rows=self._tile_rows)

        # ldj is data-independent given log_scale -> computed outside the kernel
        # (avoids a narrow (1, T) masked-store output and a per-tile re-reduction).
        ldj_scalar = B * jnp.sum(self.log_scale).astype(jnp.float32)
        if reverse:
            ldj_scalar = -ldj_scalar
        ldj = ldj_scalar * jnp.ones((T,), jnp.float32)
        return z_out, ldj


# ---------------- pure-JAX reference (mirrors the PyTorch module) ----------------
def _ref_first_call(z):
    B, T, C = z.shape
    x = z.reshape(B * T, C)
    std = jnp.std(x, axis=0, ddof=1)             # torch.std default = unbiased
    mu = jnp.mean(x / std, axis=0)
    log_scale = -jnp.log(std + 1e-6)
    shift = -mu
    z2 = jnp.exp(log_scale) * z + shift
    ldj = B * jnp.sum(log_scale) * jnp.ones((T,), jnp.float32)
    return z2, ldj, log_scale, shift


def _ref_apply(z, log_scale, shift):
    B, T, C = z.shape
    z2 = jnp.exp(log_scale) * z + shift
    ldj = B * jnp.sum(log_scale) * jnp.ones((T,), jnp.float32)
    return z2, ldj


if __name__ == "__main__":
    key = jax.random.PRNGKey(0)

    # ---- Test 1: small canonical shape; lane packing p=4 (C=32 -> W=128) -----------
    B, T, C = 2, 8, 32
    z = 1.7 * jax.random.normal(key, (B, T, C), dtype=jnp.float32) + 0.3

    model = ActNormSeq(C)

    # First call: data-dependent init path (is_initialized == False, sample=False).
    z_out, ldj = model(z, sample=False)
    jax.block_until_ready((z_out, ldj))

    z_ref, ldj_ref, ls_ref, sh_ref = _ref_first_call(z)
    assert jnp.allclose(z_out, z_ref, rtol=1e-5, atol=1e-5)
    assert jnp.allclose(ldj, ldj_ref, rtol=1e-5, atol=1e-5)
    assert jnp.allclose(model.log_scale.reshape(C), ls_ref, rtol=1e-5, atol=1e-5)
    assert jnp.allclose(model.shift.reshape(C), sh_ref, rtol=1e-5, atol=1e-5)

    # Second call: already-initialized affine path.
    z_out2, ldj2 = model(z, sample=False)
    jax.block_until_ready((z_out2, ldj2))
    z_ref2, ldj_ref2 = _ref_apply(z, model.log_scale, model.shift)
    assert jnp.allclose(z_out2, z_ref2, rtol=1e-5, atol=1e-5)
    assert jnp.allclose(ldj2, ldj_ref2, rtol=1e-5, atol=1e-5)

    # Reverse path (sample=True) on an initialized model should invert the forward map.
    z_rev, ldj_rev = model(z_out2, sample=True)
    jax.block_until_ready((z_rev, ldj_rev))
    assert jnp.allclose(z_rev, z, rtol=1e-4, atol=1e-4)
    assert jnp.allclose(ldj_rev, -ldj_ref2, rtol=1e-5, atol=1e-5)

    # ---- Test 2: multi-tile grid with a partial last tile (exercises masking) ------
    # N = 26, pack p=2 -> Np=13 packed rows, tile_rows=8 -> 2 tiles, partial last.
    B2, T2, C2 = 2, 13, 32
    key2 = jax.random.PRNGKey(0)
    z_b = 0.8 * jax.random.normal(key2, (B2, T2, C2), dtype=jnp.float32) - 0.5

    model_b = ActNormSeq(C2, tile_rows=8)
    zb_out, ldj_b = model_b(z_b, sample=False)
    jax.block_until_ready((zb_out, ldj_b))

    zb_ref, ldjb_ref, lsb_ref, shb_ref = _ref_first_call(z_b)
    assert jnp.allclose(zb_out, zb_ref, rtol=1e-5, atol=1e-5)
    assert jnp.allclose(ldj_b, ldjb_ref, rtol=1e-5, atol=1e-5)
    assert jnp.allclose(model_b.log_scale.reshape(C2), lsb_ref, rtol=1e-5, atol=1e-5)
    assert jnp.allclose(model_b.shift.reshape(C2), shb_ref, rtol=1e-5, atol=1e-5)

    # ---- Test 3: non-power-of-two channel count (C=48 -> p=2, W=96) ----------------
    B3, T3, C3 = 2, 10, 48
    z_c = 1.2 * jax.random.normal(jax.random.PRNGKey(0), (B3, T3, C3),
                                  dtype=jnp.float32) + 0.1
    model_c = ActNormSeq(C3)
    zc_out, ldj_c = model_c(z_c, sample=False)
    jax.block_until_ready((zc_out, ldj_c))
    zc_ref, ldjc_ref, lsc_ref, shc_ref = _ref_first_call(z_c)
    assert jnp.allclose(zc_out, zc_ref, rtol=1e-5, atol=1e-5)
    assert jnp.allclose(ldj_c, ldjc_ref, rtol=1e-5, atol=1e-5)
    assert jnp.allclose(model_c.log_scale.reshape(C3), lsc_ref, rtol=1e-5, atol=1e-5)
    assert jnp.allclose(model_c.shift.reshape(C3), shc_ref, rtol=1e-5, atol=1e-5)

    print("KERNEL_OK")
</pallas_src>

<mosaic_0001>
module attributes {stable_mosaic.version = 11 : i64} {
  func.func @_actnorm_stats_kernel(%arg0: i32, %arg1: memref<4x128xf32, #tpu.memory_space<vmem>>, %arg2: memref<1x128xf32, #tpu.memory_space<vmem>>, %arg3: memref<1x128xf32, #tpu.memory_space<vmem>>) attributes {dimension_semantics = [#tpu.dimension_semantics<arbitrary>], iteration_bounds = array<i64: 1>, scalar_prefetch = 0 : i64, scratch_operands = 0 : i64, tpu.core_type = #tpu.core_type<tc>, window_params = [{transform_indices = @transform_0, window_bounds = array<i64: 4, 128>}, {pipeline_mode = #tpu.pipeline_mode<synchronous>, transform_indices = @transform_1, window_bounds = array<i64: 1, 128>}, {pipeline_mode = #tpu.pipeline_mode<synchronous>, transform_indices = @transform_2, window_bounds = array<i64: 1, 128>}]} {
    %c0_i32 = arith.constant 0 : i32
    %0 = arith.cmpi eq, %arg0, %c0_i32 : i32
    %1 = arith.extui %0 : i1 to i32
    %c0_i32_0 = arith.constant 0 : i32
    %2 = arith.cmpi ne, %1, %c0_i32_0 : i32
    scf.if %2 {
      %cst_11 = arith.constant 0.000000e+00 : f32
      %15 = vector.broadcast %cst_11 : f32 to vector<1x128xf32>
      %c0_12 = arith.constant 0 : index
      %c0_13 = arith.constant 0 : index
      %16 = vector.load %arg2[%c0_12, %c0_13] : memref<1x128xf32, #tpu.memory_space<vmem>>, vector<1x128xf32>
      tpu.vector_store %arg2[%c0_12, %c0_13], %15 {strides = array<i32>} : memref<1x128xf32, #tpu.memory_space<vmem>>, vector<1x128xf32>,
      %cst_14 = arith.constant 0.000000e+00 : f32
      %17 = vector.broadcast %cst_14 : f32 to vector<1x128xf32>
      %c0_15 = arith.constant 0 : index
      %c0_16 = arith.constant 0 : index
      %18 = vector.load %arg3[%c0_15, %c0_16] : memref<1x128xf32, #tpu.memory_space<vmem>>, vector<1x128xf32>
      tpu.vector_store %arg3[%c0_15, %c0_16], %17 {strides = array<i32>} : memref<1x128xf32, #tpu.memory_space<vmem>>, vector<1x128xf32>,
    } else {
    }
    %c0 = arith.constant 0 : index
    %c0_1 = arith.constant 0 : index
    %3 = vector.load %arg1[%c0, %c0_1] : memref<4x128xf32, #tpu.memory_space<vmem>>, vector<4x128xf32>
    %c0_2 = arith.constant 0 : index
    %c0_3 = arith.constant 0 : index
    %4 = vector.load %arg2[%c0_2, %c0_3] : memref<1x128xf32, #tpu.memory_space<vmem>>, vector<1x128xf32>
    %cst = arith.constant dense<0.000000e+00> : vector<128xf32>
    %5 = vector.multi_reduction <add>, %3, %cst [0] : vector<4x128xf32> to vector<128xf32>
    %6 = vector.shape_cast %5 : vector<128xf32> to vector<1x128xf32>
    %7 = arith.addf %4, %6 : vector<1x128xf32>
    %c0_4 = arith.constant 0 : index
    %c0_5 = arith.constant 0 : index
    %8 = vector.load %arg2[%c0_4, %c0_5] : memref<1x128xf32, #tpu.memory_space<vmem>>, vector<1x128xf32>
    tpu.vector_store %arg2[%c0_4, %c0_5], %7 {strides = array<i32>} : memref<1x128xf32, #tpu.memory_space<vmem>>, vector<1x128xf32>,
    %c0_6 = arith.constant 0 : index
    %c0_7 = arith.constant 0 : index
    %9 = vector.load %arg3[%c0_6, %c0_7] : memref<1x128xf32, #tpu.memory_space<vmem>>, vector<1x128xf32>
    %10 = arith.mulf %3, %3 : vector<4x128xf32>
    %cst_8 = arith.constant dense<0.000000e+00> : vector<128xf32>
    %11 = vector.multi_reduction <add>, %10, %cst_8 [0] : vector<4x128xf32> to vector<128xf32>
    %12 = vector.shape_cast %11 : vector<128xf32> to vector<1x128xf32>
    %13 = arith.addf %9, %12 : vector<1x128xf32>
    %c0_9 = arith.constant 0 : index
    %c0_10 = arith.constant 0 : index
    %14 = vector.load %arg3[%c0_9, %c0_10] : memref<1x128xf32, #tpu.memory_space<vmem>>, vector<1x128xf32>
    tpu.vector_store %arg3[%c0_9, %c0_10], %13 {strides = array<i32>} : memref<1x128xf32, #tpu.memory_space<vmem>>, vector<1x128xf32>,
    return
  }
  func.func @transform_0(%arg0: i32) -> (i32, i32) {
    %c0_i32 = arith.constant 0 : i32
    %c0_i32_0 = arith.constant 0 : i32
    return %arg0, %c0_i32 : i32, i32
  }
  func.func @transform_1(%arg0: i32) -> (i32, i32) {
    %c0_i32 = arith.constant 0 : i32
    %c0_i32_0 = arith.constant 0 : i32
    %c0_i32_1 = arith.constant 0 : i32
    return %c0_i32, %c0_i32_0 : i32, i32
  }
  func.func @transform_2(%arg0: i32) -> (i32, i32) {
    %c0_i32 = arith.constant 0 : i32
    %c0_i32_0 = arith.constant 0 : i32
    %c0_i32_1 = arith.constant 0 : i32
    return %c0_i32, %c0_i32_0 : i32, i32
  }
}

</mosaic_0001>

<bundles_post_ra>
// kernel: tpu_custom_call.1
= control target key start
LH: loop header
LB: loop body
LE: loop exit
PB: predicated region body
PF: predicated region fallthrough
CT: control target
= control target key end

     0   :  { %8 = vsyncpa [#allocation3], 0  ;;  %s180_s0 = inlined_call_operand.hbm [shape: f32[4,128], index: 0, kind: input, shape index: {}]   ;;  %s181_s1 = inlined_call_operand.hbm [shape: f32[1,128], index: 1, kind: output, shape index: {0}]   ;;  %s182_s2 = inlined_call_operand.hbm [shape: f32[1,128], index: 2, kind: output, shape index: {1}]  }
   0x1   :  { %9 = vsyncpa [#allocation4], 0 }
   0x2   :  { %10 = vsyncpa [#allocation7], 0  ;;  %s152_s9 = smov [#allocation2]  }
   0x3   :  { %s17_s10 = sshll.u32 %s152_s9, 4  ;;  %s18_s10 = int_to_ptr.vmem [resolvable:$true] %s17_s10 }
   0x4   :  { %s94_s11 = scalar_lea.vmem %s18_s10, 64  ;;  %p99_p1 = scmp.lt.s32.totalorder %s18_s10, %s18_s10 }
   0x5   :  { %p95_p0 = scmp.ne.s32.totalorder %s18_s10, %s94_s11  ;;  %p100_p2 = scmp.lt.s32.totalorder %s94_s11, %s94_s11 }
   0x7   :  { %p101_p3 = por %p100_p2, %p99_p1 }
   0x9   :  { %p102_p4 = pnand %p101_p3, %p95_p0 }
   0xb   :  { %105 = shalt.err (!%p102_p4)
}
   0xc   :  { %20 = dma.hbm_to_vmem [thread:$0]  %s180_s0, 64, %s18_s10, [#allocation3]  }
   0xd   :  { %146 = dma.done.wait [#allocation3], 64  }
   0xe   :  { %147 = vsyncadd [#allocation3], 4294967232  ;;  %v153_v0 = vmov 0.0   ;;  %vm32_vm0 = vcmask 1043456   ;;  %v30_v1 = vld [vmem:[#allocation2] sm:$0xf] }
   0xf   :  { %28 = vst [vmem:[#allocation5] sm:$0x1] %v153_v0  ;;  %29 = vst [vmem:[#allocation6] sm:$0x1] %v153_v0  ;;  %v33_v2 = vsel %vm32_vm0, %v30_v1, 0.0  ;;  %v43_v3 = vmul.f32 %v30_v1, %v30_v1  ;;  %s154_s0 = smov [#allocation5]  }
  0x10   :  { %v34_v4 = vrot.slane %v33_v2, 4  ;;  %s59_s14 = sshll.u32 %s154_s0, 4  ;;  %s155_s15 = smov [#allocation6]   ;;  %s60_s14 = int_to_ptr.vmem [resolvable:$true] %s59_s14 }
  0x11   :  { %v44_v5 = vsel %vm32_vm0, %v43_v3, 0.0  ;;  %s69_s16 = sshll.u32 %s155_s15, 4  ;;  %s106_s17 = scalar_lea.vmem %s60_s14, 16  ;;  %s70_s16 = int_to_ptr.vmem [resolvable:$true] %s69_s16 }
  0x12   :  { %v35_v6 = vadd.f32 %v34_v4, %v33_v2  ;;  %v45_v7 = vrot.slane %v44_v5, 4  ;;  %p107_p5 = scmp.ne.s32.totalorder %s60_s14, %s106_s17  ;;  %s110_s18 = scalar_lea.vmem %s60_s14, 32 }
  0x13   :  { %p111_p6 = scmp.lt.s32.totalorder %s60_s14, %s60_s14  ;;  %p112_p7 = scmp.lt.s32.totalorder %s110_s18, %s106_s17 }
  0x14   :  { %v36_v8 = vrot.slane %v35_v6, 2  ;;  %v46_v9 = vadd.f32 %v45_v7, %v44_v5 }
  0x15   :  { %p113_p8 = por %p112_p7, %p111_p6 }
  0x16   :  { %v37_v10 = vadd.f32 %v36_v8, %v35_v6  ;;  %v47_v11 = vrot.slane %v46_v9, 2  ;;  %v31_v14 = vld [vmem:[#allocation5] sm:$0x1]  ;;  %v42_v17 = vld [vmem:[#allocation6] sm:$0x1] }
  0x17   :  { %p114_p9 = pnand %p113_p8, %p107_p5 }
  0x18   :  { %v38_v12 = vrot.slane %v37_v10, 1  ;;  %v48_v13 = vadd.f32 %v47_v11, %v46_v9 }
  0x1a   :  { %v39_v15 = vadd.f32 %v38_v12, %v37_v10  ;;  %v49_v16 = vrot.slane %v48_v13, 1 }
  0x1c   :  { %v40_v18 = vadd.f32 %v39_v15, %v31_v14  ;;  %v50_v19 = vadd.f32 %v49_v16, %v48_v13 }
  0x1e   :  { %41 = vst [vmem:[#allocation5] sm:$0x1] %v40_v18  ;;  %v51_v20 = vadd.f32 %v50_v19, %v42_v17 }
  0x1f   :  { %117 = shalt.err (!%p114_p9)
}
  0x20   :  { %62 = dma.vmem_to_hbm [thread:$0]  %s60_s14, 16, %s181_s1, [#allocation4]   ;;  %52 = vst [vmem:[#allocation6] sm:$0x1] %v51_v20 }
  0x21   :  { %s126_s21 = scalar_lea.vmem %s70_s16, 16  ;;  %s130_s22 = scalar_lea.vmem %s70_s16, 32 }
  0x22   :  { %p127_p10 = scmp.ne.s32.totalorder %s70_s16, %s126_s21  ;;  %p131_p11 = scmp.lt.s32.totalorder %s70_s16, %s70_s16 }
  0x23   :  { %p132_p12 = scmp.lt.s32.totalorder %s130_s22, %s126_s21 }
  0x25   :  { %p133_p13 = por %p132_p12, %p131_p11 }
  0x27   :  { %p134_p0 = pnand %p133_p13, %p127_p10 }
  0x29   :  { %137 = shalt.err (!%p134_p0)
}
  0x2a   :  { %72 = dma.vmem_to_hbm [thread:$0]  %s70_s16, 16, %s182_s2, [#allocation7]  }
  0x2b   :  { %148 = dma.done.wait [#allocation4], 16  }
  0x2c   :  { %149 = vsyncadd [#allocation4], 4294967280 }
  0x2d   :  { %150 = dma.done.wait [#allocation7], 16  }
  0x2e   :  { %151 = vsyncadd [#allocation7], 4294967280 }
  0x2f   :  { %79 = vsyncpa [#allocation3], 1 }
  0x30   :  { %80 = vsyncpa [#allocation4], 1 }
  0x31   :  { %81 = vsyncpa [#allocation7], 1 }

</bundles_post_ra>
